<compile_context>
chip_gen: v7x
topology: tpu7x:2x2x1
jax: 0.10.0
libtpu: 0.0.40
codegen_flags: <defaults>
</compile_context>

<pallas_src>
import functools
import math

import jax
import jax.numpy as jnp
import numpy as np
from jax import lax
from jax.experimental import pallas as pl
from jax.experimental.pallas import tpu as pltpu


def _round_up(n, m):
    return ((n + m - 1) // m) * m


# ---------------------------------------------------------------------------
# Fused kernel: input projection -> unrolled LSTM recurrence -> fused 3-head FFN
# ---------------------------------------------------------------------------
def _recurrent_block_kernel(
    x_ref,        # (B*T, H)      batch-major rows (row index = b*T + t)
    w_ih_t_ref,   # (H, 4*hid)
    w_hh_t_ref,   # (hid, 4*hid)
    b_lstm_ref,   # (1, 4*hid)    b_ih + b_hh
    w1c_t_ref,    # (hid, Dp)     lane-padded concat of head-1 weights (p|q|u|0)
    b1c_ref,      # (1, Dp)
    w2bd_ref,     # (Dp, Dp)      lane-padded block-diagonal head-2 weights
    b2c_ref,      # (1, Dp)
    out_ref,      # (B*T, Dp)     batch-major, lane-dense (Dp = multiple of 128)
    *, T, B, hid,
):
    f32 = jnp.float32
    x = x_ref[...].astype(f32)                                    # (B*T, H)

    # Hoisted input projection: one matmul for all timesteps (off the serial
    # critical path).  Only h @ W_hh^T stays inside the recurrence.
    xproj = (
        jnp.dot(x, w_ih_t_ref[...], preferred_element_type=f32)
        + b_lstm_ref[...]
    )                                                             # (B*T, 4*hid)
    w_hh_t = w_hh_t_ref[...]                                      # (hid, 4*hid)

    h = jnp.zeros((B, hid), f32)
    c = jnp.zeros((B, hid), f32)
    hs = []

    # Unrolled time recurrence (T is a trace-time constant) -> static slices.
    for t in range(T):
        # Batch rows for timestep t (row b*T + t). These only depend on xproj,
        # so the compiler hoists them off the h->h dependent chain.
        xp_t = jnp.concatenate(
            [xproj[b * T + t:b * T + t + 1, :] for b in range(B)], axis=0
        )                                                         # (B, 4*hid)
        gates = xp_t + jnp.dot(h, w_hh_t, preferred_element_type=f32)
        i_g = jax.nn.sigmoid(gates[:, 0 * hid:1 * hid])
        f_g = jax.nn.sigmoid(gates[:, 1 * hid:2 * hid])
        g_g = jnp.tanh(gates[:, 2 * hid:3 * hid])
        o_g = jax.nn.sigmoid(gates[:, 3 * hid:4 * hid])
        c = f_g * c + i_g * g_g
        h = o_g * jnp.tanh(c)
        hs.append(h)

    # Assemble h in BATCH-MAJOR order (row b*T + t) as pure value ops -- no
    # scratch stores or VMEM round trip on the recurrence path.
    h_bm = jnp.concatenate(
        [hs[t][b:b + 1, :] for b in range(B) for t in range(T)], axis=0
    )                                                             # (B*T, hid)

    # Fused 3-head FeedForward (lane-padded to Dp): Linear -> exact GELU -> Linear.
    z = jnp.dot(h_bm, w1c_t_ref[...], preferred_element_type=f32) + b1c_ref[...]
    z = 0.5 * z * (1.0 + lax.erf(z * (1.0 / math.sqrt(2.0))))     # nn.GELU() exact
    y = jnp.dot(z, w2bd_ref[...], preferred_element_type=f32) + b2c_ref[...]
    out_ref[...] = y.astype(out_ref.dtype)                        # single lane-dense store


# ---------------------------------------------------------------------------
# Parameter prep (done ONCE, outside the steady-state forward path)
# ---------------------------------------------------------------------------
def prepare_params(params, lane_pad=128):
    """Transpose / fuse / concatenate / lane-pad weights for the fused kernel."""
    hid = params["w_hh"].shape[1]
    Hout = params["p_w1"].shape[0]
    Dp = _round_up(3 * Hout, lane_pad)   # lane-dense padded head width

    w1c_t = jnp.zeros((hid, Dp), jnp.float32)
    b1c = jnp.zeros((1, Dp), jnp.float32)
    w2bd = jnp.zeros((Dp, Dp), jnp.float32)
    b2c = jnp.zeros((1, Dp), jnp.float32)
    for k, n in enumerate(("p", "q", "u")):
        lo, hi = k * Hout, (k + 1) * Hout
        w1c_t = w1c_t.at[:, lo:hi].set(jnp.transpose(params[f"{n}_w1"]))
        b1c = b1c.at[0, lo:hi].set(params[f"{n}_b1"])
        w2bd = w2bd.at[lo:hi, lo:hi].set(jnp.transpose(params[f"{n}_w2"]))
        b2c = b2c.at[0, lo:hi].set(params[f"{n}_b2"])

    return {
        "w_ih_t": jnp.transpose(params["w_ih"]),                        # (H, 4*hid)
        "w_hh_t": jnp.transpose(params["w_hh"]),                        # (hid, 4*hid)
        "b_lstm": (params["b_ih"] + params["b_hh"]).reshape(1, 4 * hid),
        "w1c_t": w1c_t,                                                 # (hid, Dp)
        "b1c": b1c,                                                     # (1, Dp)
        "w2bd": w2bd,                                                   # (Dp, Dp)
        "b2c": b2c,                                                     # (1, Dp)
    }


# ---------------------------------------------------------------------------
# Full Recurrent_Block forward (single pallas_call, no grid)
# ---------------------------------------------------------------------------
def recurrent_block_forward(x, prep, *, Hout):
    """x: (B, T, H) batch-first -> (p, q, u), each (B, T, Hout)."""
    B, T, H = x.shape
    hid = prep["w_hh_t"].shape[0]
    Dp = prep["b1c"].shape[-1]

    # dropout: identity in eval mode
    # TODO(synk): training-mode dropout would need pltpu.prng_seed/prng_random_bits in-kernel.

    # Free contiguous collapse (no transpose / data movement): row index = b*T + t.
    x_rows = x.reshape(B * T, H)

    kernel = functools.partial(_recurrent_block_kernel, T=T, B=B, hid=hid)

    vmem_spec = pl.BlockSpec(memory_space=pltpu.MemorySpace.VMEM)
    out = pl.pallas_call(
        kernel,
        out_shape=jax.ShapeDtypeStruct((B * T, Dp), x.dtype),
        in_specs=[vmem_spec] * 8,
        out_specs=vmem_spec,
        compiler_params=pltpu.CompilerParams(
            vmem_limit_bytes=32 * 1024 * 1024,   # explicit budget (v7x: 64 MiB physical)
        ),
    )(
        x_rows,
        prep["w_ih_t"], prep["w_hh_t"], prep["b_lstm"],
        prep["w1c_t"], prep["b1c"], prep["w2bd"], prep["b2c"],
    )

    # Output is already batch-major: free reshape + cheap column slices only.
    out3 = out.reshape(B, T, Dp)
    p = out3[..., 0 * Hout:1 * Hout]
    q = out3[..., 1 * Hout:2 * Hout]
    u = out3[..., 2 * Hout:3 * Hout]
    return p, q, u


# ---------------------------------------------------------------------------
# Pure-JAX reference (correctness sanity check)
# ---------------------------------------------------------------------------
def _lstm_ref(x, w_ih, w_hh, b_ih, b_hh):
    B, T, H = x.shape
    hid = w_hh.shape[1]

    def step(carry, xt):
        h, c = carry
        gates = xt @ w_ih.T + b_ih + h @ w_hh.T + b_hh
        i = jax.nn.sigmoid(gates[:, 0 * hid:1 * hid])
        f = jax.nn.sigmoid(gates[:, 1 * hid:2 * hid])
        g = jnp.tanh(gates[:, 2 * hid:3 * hid])
        o = jax.nn.sigmoid(gates[:, 3 * hid:4 * hid])
        c = f * c + i * g
        h = o * jnp.tanh(c)
        return (h, c), h

    init = (jnp.zeros((B, hid), x.dtype), jnp.zeros((B, hid), x.dtype))
    _, hs = lax.scan(step, init, jnp.transpose(x, (1, 0, 2)))
    return jnp.transpose(hs, (1, 0, 2))


def _ffn_ref(h, w1, b1, w2, b2):
    z = h @ w1.T + b1
    z = 0.5 * z * (1.0 + lax.erf(z / jnp.sqrt(2.0)))
    return z @ w2.T + b2


def _forward_ref(x, params):
    h = _lstm_ref(x, params["w_ih"], params["w_hh"], params["b_ih"], params["b_hh"])
    return tuple(
        _ffn_ref(h, params[f"{n}_w1"], params[f"{n}_b1"],
                 params[f"{n}_w2"], params[f"{n}_b2"])
        for n in ("p", "q", "u")
    )


# ---------------------------------------------------------------------------
# Deterministic parameter init (shapes match the PyTorch module's __init__)
# ---------------------------------------------------------------------------
def init_params(key, H, hidden_size):
    keys = jax.random.split(key, 20)
    k = iter(keys)
    u = lambda kk, shape, s: jax.random.uniform(kk, shape, jnp.float32, -s, s)
    s_lstm = 1.0 / math.sqrt(hidden_size)
    params = {
        "w_ih": u(next(k), (4 * hidden_size, H), s_lstm),
        "w_hh": u(next(k), (4 * hidden_size, hidden_size), s_lstm),
        "b_ih": u(next(k), (4 * hidden_size,), s_lstm),
        "b_hh": u(next(k), (4 * hidden_size,), s_lstm),
    }
    s1 = 1.0 / math.sqrt(hidden_size)
    s2 = 1.0 / math.sqrt(H)
    for name in ("p", "q", "u"):
        params[f"{name}_w1"] = u(next(k), (H, hidden_size), s1)   # feedforw_1
        params[f"{name}_b1"] = u(next(k), (H,), s1)
        params[f"{name}_w2"] = u(next(k), (H, H), s2)             # feedforw_2
        params[f"{name}_b2"] = u(next(k), (H,), s2)
    return params


if __name__ == "__main__":
    B, T, H, hidden_size = 2, 8, 32, 32   # args.H = 32, args.lstm_hidden_size = 32

    key = jax.random.PRNGKey(0)
    kx, kp = jax.random.split(key)
    x = jax.random.normal(kx, (B, T, H), jnp.float32)
    params = init_params(kp, H, hidden_size)

    # Weight transposition / head fusion / lane padding done once, outside the
    # jitted forward.
    prep = jax.tree_util.tree_map(jax.device_put, prepare_params(params))

    fwd = jax.jit(recurrent_block_forward, static_argnames=("Hout",))
    p, q, u = fwd(x, prep, Hout=H)
    jax.block_until_ready((p, q, u))

    # sanity check against a pure-JAX reference
    p_ref, q_ref, u_ref = _forward_ref(x, params)
    np.testing.assert_allclose(np.asarray(p), np.asarray(p_ref), rtol=1e-4, atol=1e-4)
    np.testing.assert_allclose(np.asarray(q), np.asarray(q_ref), rtol=1e-4, atol=1e-4)
    np.testing.assert_allclose(np.asarray(u), np.asarray(u_ref), rtol=1e-4, atol=1e-4)

    print("KERNEL_OK")
</pallas_src>

<mosaic_0001>
module attributes {stable_mosaic.version = 11 : i64} {
  func.func @_recurrent_block_kernel(%arg0: memref<16x32xf32, #tpu.memory_space<vmem>>, %arg1: memref<32x128xf32, #tpu.memory_space<vmem>>, %arg2: memref<32x128xf32, #tpu.memory_space<vmem>>, %arg3: memref<1x128xf32, #tpu.memory_space<vmem>>, %arg4: memref<32x128xf32, #tpu.memory_space<vmem>>, %arg5: memref<1x128xf32, #tpu.memory_space<vmem>>, %arg6: memref<128x128xf32, #tpu.memory_space<vmem>>, %arg7: memref<1x128xf32, #tpu.memory_space<vmem>>, %arg8: memref<16x128xf32, #tpu.memory_space<vmem>>) attributes {dimension_semantics = [], scalar_prefetch = 0 : i64, scratch_operands = 0 : i64, tpu.core_type = #tpu.core_type<tc>} {
    %c0 = arith.constant 0 : index
    %c0_0 = arith.constant 0 : index
    %0 = vector.load %arg0[%c0, %c0_0] : memref<16x32xf32, #tpu.memory_space<vmem>>, vector<16x32xf32>
    %c0_1 = arith.constant 0 : index
    %c0_2 = arith.constant 0 : index
    %1 = vector.load %arg1[%c0_1, %c0_2] : memref<32x128xf32, #tpu.memory_space<vmem>>, vector<32x128xf32>
    %cst = arith.constant dense<0.000000e+00> : vector<16x128xf32>
    %2 = tpu.matmul %0, %1, %cst {dimension_numbers = #tpu.dot_dimension_numbers<[1], [0], [0], [1], [0, 0, 1, 1], [], []>} : vector<16x32xf32>, vector<32x128xf32>, vector<16x128xf32> -> vector<16x128xf32>
    %c0_3 = arith.constant 0 : index
    %c0_4 = arith.constant 0 : index
    %3 = vector.load %arg3[%c0_3, %c0_4] : memref<1x128xf32, #tpu.memory_space<vmem>>, vector<1x128xf32>
    %4 = vector.broadcast %3 : vector<1x128xf32> to vector<16x128xf32>
    %5 = arith.addf %2, %4 : vector<16x128xf32>
    %c0_5 = arith.constant 0 : index
    %c0_6 = arith.constant 0 : index
    %6 = vector.load %arg2[%c0_5, %c0_6] : memref<32x128xf32, #tpu.memory_space<vmem>>, vector<32x128xf32>
    %cst_7 = arith.constant 0.000000e+00 : f32
    %7 = vector.broadcast %cst_7 : f32 to vector<2x32xf32>
    %cst_8 = arith.constant 0.000000e+00 : f32
    %8 = vector.broadcast %cst_8 : f32 to vector<2x32xf32>
    %9 = vector.extract_strided_slice %5 {offsets = [0, 0], sizes = [1, 128], strides = [1, 1]} : vector<16x128xf32> to vector<1x128xf32>
    %10 = vector.extract_strided_slice %5 {offsets = [8, 0], sizes = [1, 128], strides = [1, 1]} : vector<16x128xf32> to vector<1x128xf32>
    %11 = tpu.concatenate %9, %10 in 0 : vector<1x128xf32>, vector<1x128xf32> -> vector<2x128xf32>
    %cst_9 = arith.constant dense<0.000000e+00> : vector<2x128xf32>
    %12 = tpu.matmul %7, %6, %cst_9 {dimension_numbers = #tpu.dot_dimension_numbers<[1], [0], [0], [1], [0, 0, 1, 1], [], []>} : vector<2x32xf32>, vector<32x128xf32>, vector<2x128xf32> -> vector<2x128xf32>
    %13 = arith.addf %11, %12 : vector<2x128xf32>
    %14 = vector.extract_strided_slice %13 {offsets = [0, 0], sizes = [2, 32], strides = [1, 1]} : vector<2x128xf32> to vector<2x32xf32>
    %15 = arith.negf %14 : vector<2x32xf32>
    %16 = math.exp %15 : vector<2x32xf32>
    %cst_10 = arith.constant 1.000000e+00 : f32
    %17 = vector.broadcast %cst_10 : f32 to vector<2x32xf32>
    %18 = arith.addf %17, %16 : vector<2x32xf32>
    %19 = arith.divf %17, %18 : vector<2x32xf32>
    %20 = vector.extract_strided_slice %13 {offsets = [0, 32], sizes = [2, 32], strides = [1, 1]} : vector<2x128xf32> to vector<2x32xf32>
    %21 = arith.negf %20 : vector<2x32xf32>
    %22 = math.exp %21 : vector<2x32xf32>
    %cst_11 = arith.constant 1.000000e+00 : f32
    %23 = vector.broadcast %cst_11 : f32 to vector<2x32xf32>
    %24 = arith.addf %23, %22 : vector<2x32xf32>
    %25 = arith.divf %23, %24 : vector<2x32xf32>
    %26 = vector.extract_strided_slice %13 {offsets = [0, 64], sizes = [2, 32], strides = [1, 1]} : vector<2x128xf32> to vector<2x32xf32>
    %27 = math.tanh %26 : vector<2x32xf32>
    %28 = vector.extract_strided_slice %13 {offsets = [0, 96], sizes = [2, 32], strides = [1, 1]} : vector<2x128xf32> to vector<2x32xf32>
    %29 = arith.negf %28 : vector<2x32xf32>
    %30 = math.exp %29 : vector<2x32xf32>
    %cst_12 = arith.constant 1.000000e+00 : f32
    %31 = vector.broadcast %cst_12 : f32 to vector<2x32xf32>
    %32 = arith.addf %31, %30 : vector<2x32xf32>
    %33 = arith.divf %31, %32 : vector<2x32xf32>
    %34 = arith.mulf %25, %8 : vector<2x32xf32>
    %35 = arith.mulf %19, %27 : vector<2x32xf32>
    %36 = arith.addf %34, %35 : vector<2x32xf32>
    %37 = math.tanh %36 : vector<2x32xf32>
    %38 = arith.mulf %33, %37 : vector<2x32xf32>
    %39 = vector.extract_strided_slice %5 {offsets = [1, 0], sizes = [1, 128], strides = [1, 1]} : vector<16x128xf32> to vector<1x128xf32>
    %40 = vector.extract_strided_slice %5 {offsets = [9, 0], sizes = [1, 128], strides = [1, 1]} : vector<16x128xf32> to vector<1x128xf32>
    %41 = tpu.concatenate %39, %40 in 0 : vector<1x128xf32>, vector<1x128xf32> -> vector<2x128xf32>
    %cst_13 = arith.constant dense<0.000000e+00> : vector<2x128xf32>
    %42 = tpu.matmul %38, %6, %cst_13 {dimension_numbers = #tpu.dot_dimension_numbers<[1], [0], [0], [1], [0, 0, 1, 1], [], []>} : vector<2x32xf32>, vector<32x128xf32>, vector<2x128xf32> -> vector<2x128xf32>
    %43 = arith.addf %41, %42 : vector<2x128xf32>
    %44 = vector.extract_strided_slice %43 {offsets = [0, 0], sizes = [2, 32], strides = [1, 1]} : vector<2x128xf32> to vector<2x32xf32>
    %45 = arith.negf %44 : vector<2x32xf32>
    %46 = math.exp %45 : vector<2x32xf32>
    %cst_14 = arith.constant 1.000000e+00 : f32
    %47 = vector.broadcast %cst_14 : f32 to vector<2x32xf32>
    %48 = arith.addf %47, %46 : vector<2x32xf32>
    %49 = arith.divf %47, %48 : vector<2x32xf32>
    %50 = vector.extract_strided_slice %43 {offsets = [0, 32], sizes = [2, 32], strides = [1, 1]} : vector<2x128xf32> to vector<2x32xf32>
    %51 = arith.negf %50 : vector<2x32xf32>
    %52 = math.exp %51 : vector<2x32xf32>
    %cst_15 = arith.constant 1.000000e+00 : f32
    %53 = vector.broadcast %cst_15 : f32 to vector<2x32xf32>
    %54 = arith.addf %53, %52 : vector<2x32xf32>
    %55 = arith.divf %53, %54 : vector<2x32xf32>
    %56 = vector.extract_strided_slice %43 {offsets = [0, 64], sizes = [2, 32], strides = [1, 1]} : vector<2x128xf32> to vector<2x32xf32>
    %57 = math.tanh %56 : vector<2x32xf32>
    %58 = vector.extract_strided_slice %43 {offsets = [0, 96], sizes = [2, 32], strides = [1, 1]} : vector<2x128xf32> to vector<2x32xf32>
    %59 = arith.negf %58 : vector<2x32xf32>
    %60 = math.exp %59 : vector<2x32xf32>
    %cst_16 = arith.constant 1.000000e+00 : f32
    %61 = vector.broadcast %cst_16 : f32 to vector<2x32xf32>
    %62 = arith.addf %61, %60 : vector<2x32xf32>
    %63 = arith.divf %61, %62 : vector<2x32xf32>
    %64 = arith.mulf %55, %36 : vector<2x32xf32>
    %65 = arith.mulf %49, %57 : vector<2x32xf32>
    %66 = arith.addf %64, %65 : vector<2x32xf32>
    %67 = math.tanh %66 : vector<2x32xf32>
    %68 = arith.mulf %63, %67 : vector<2x32xf32>
    %69 = vector.extract_strided_slice %5 {offsets = [2, 0], sizes = [1, 128], strides = [1, 1]} : vector<16x128xf32> to vector<1x128xf32>
    %70 = vector.extract_strided_slice %5 {offsets = [10, 0], sizes = [1, 128], strides = [1, 1]} : vector<16x128xf32> to vector<1x128xf32>
    %71 = tpu.concatenate %69, %70 in 0 : vector<1x128xf32>, vector<1x128xf32> -> vector<2x128xf32>
    %cst_17 = arith.constant dense<0.000000e+00> : vector<2x128xf32>
    %72 = tpu.matmul %68, %6, %cst_17 {dimension_numbers = #tpu.dot_dimension_numbers<[1], [0], [0], [1], [0, 0, 1, 1], [], []>} : vector<2x32xf32>, vector<32x128xf32>, vector<2x128xf32> -> vector<2x128xf32>
    %73 = arith.addf %71, %72 : vector<2x128xf32>
    %74 = vector.extract_strided_slice %73 {offsets = [0, 0], sizes = [2, 32], strides = [1, 1]} : vector<2x128xf32> to vector<2x32xf32>
    %75 = arith.negf %74 : vector<2x32xf32>
    %76 = math.exp %75 : vector<2x32xf32>
    %cst_18 = arith.constant 1.000000e+00 : f32
    %77 = vector.broadcast %cst_18 : f32 to vector<2x32xf32>
    %78 = arith.addf %77, %76 : vector<2x32xf32>
    %79 = arith.divf %77, %78 : vector<2x32xf32>
    %80 = vector.extract_strided_slice %73 {offsets = [0, 32], sizes = [2, 32], strides = [1, 1]} : vector<2x128xf32> to vector<2x32xf32>
    %81 = arith.negf %80 : vector<2x32xf32>
    %82 = math.exp %81 : vector<2x32xf32>
    %cst_19 = arith.constant 1.000000e+00 : f32
    %83 = vector.broadcast %cst_19 : f32 to vector<2x32xf32>
    %84 = arith.addf %83, %82 : vector<2x32xf32>
    %85 = arith.divf %83, %84 : vector<2x32xf32>
    %86 = vector.extract_strided_slice %73 {offsets = [0, 64], sizes = [2, 32], strides = [1, 1]} : vector<2x128xf32> to vector<2x32xf32>
    %87 = math.tanh %86 : vector<2x32xf32>
    %88 = vector.extract_strided_slice %73 {offsets = [0, 96], sizes = [2, 32], strides = [1, 1]} : vector<2x128xf32> to vector<2x32xf32>
    %89 = arith.negf %88 : vector<2x32xf32>
    %90 = math.exp %89 : vector<2x32xf32>
    %cst_20 = arith.constant 1.000000e+00 : f32
    %91 = vector.broadcast %cst_20 : f32 to vector<2x32xf32>
    %92 = arith.addf %91, %90 : vector<2x32xf32>
    %93 = arith.divf %91, %92 : vector<2x32xf32>
    %94 = arith.mulf %85, %66 : vector<2x32xf32>
    %95 = arith.mulf %79, %87 : vector<2x32xf32>
    %96 = arith.addf %94, %95 : vector<2x32xf32>
    %97 = math.tanh %96 : vector<2x32xf32>
    %98 = arith.mulf %93, %97 : vector<2x32xf32>
    %99 = vector.extract_strided_slice %5 {offsets = [3, 0], sizes = [1, 128], strides = [1, 1]} : vector<16x128xf32> to vector<1x128xf32>
    %100 = vector.extract_strided_slice %5 {offsets = [11, 0], sizes = [1, 128], strides = [1, 1]} : vector<16x128xf32> to vector<1x128xf32>
    %101 = tpu.concatenate %99, %100 in 0 : vector<1x128xf32>, vector<1x128xf32> -> vector<2x128xf32>
    %cst_21 = arith.constant dense<0.000000e+00> : vector<2x128xf32>
    %102 = tpu.matmul %98, %6, %cst_21 {dimension_numbers = #tpu.dot_dimension_numbers<[1], [0], [0], [1], [0, 0, 1, 1], [], []>} : vector<2x32xf32>, vector<32x128xf32>, vector<2x128xf32> -> vector<2x128xf32>
    %103 = arith.addf %101, %102 : vector<2x128xf32>
    %104 = vector.extract_strided_slice %103 {offsets = [0, 0], sizes = [2, 32], strides = [1, 1]} : vector<2x128xf32> to vector<2x32xf32>
    %105 = arith.negf %104 : vector<2x32xf32>
    %106 = math.exp %105 : vector<2x32xf32>
    %cst_22 = arith.constant 1.000000e+00 : f32
    %107 = vector.broadcast %cst_22 : f32 to vector<2x32xf32>
    %108 = arith.addf %107, %106 : vector<2x32xf32>
    %109 = arith.divf %107, %108 : vector<2x32xf32>
    %110 = vector.extract_strided_slice %103 {offsets = [0, 32], sizes = [2, 32], strides = [1, 1]} : vector<2x128xf32> to vector<2x32xf32>
    %111 = arith.negf %110 : vector<2x32xf32>
    %112 = math.exp %111 : vector<2x32xf32>
    %cst_23 = arith.constant 1.000000e+00 : f32
    %113 = vector.broadcast %cst_23 : f32 to vector<2x32xf32>
    %114 = arith.addf %113, %112 : vector<2x32xf32>
    %115 = arith.divf %113, %114 : vector<2x32xf32>
    %116 = vector.extract_strided_slice %103 {offsets = [0, 64], sizes = [2, 32], strides = [1, 1]} : vector<2x128xf32> to vector<2x32xf32>
    %117 = math.tanh %116 : vector<2x32xf32>
    %118 = vector.extract_strided_slice %103 {offsets = [0, 96], sizes = [2, 32], strides = [1, 1]} : vector<2x128xf32> to vector<2x32xf32>
    %119 = arith.negf %118 : vector<2x32xf32>
    %120 = math.exp %119 : vector<2x32xf32>
    %cst_24 = arith.constant 1.000000e+00 : f32
    %121 = vector.broadcast %cst_24 : f32 to vector<2x32xf32>
    %122 = arith.addf %121, %120 : vector<2x32xf32>
    %123 = arith.divf %121, %122 : vector<2x32xf32>
    %124 = arith.mulf %115, %96 : vector<2x32xf32>
    %125 = arith.mulf %109, %117 : vector<2x32xf32>
    %126 = arith.addf %124, %125 : vector<2x32xf32>
    %127 = math.tanh %126 : vector<2x32xf32>
    %128 = arith.mulf %123, %127 : vector<2x32xf32>
    %129 = vector.extract_strided_slice %5 {offsets = [4, 0], sizes = [1, 128], strides = [1, 1]} : vector<16x128xf32> to vector<1x128xf32>
    %130 = vector.extract_strided_slice %5 {offsets = [12, 0], sizes = [1, 128], strides = [1, 1]} : vector<16x128xf32> to vector<1x128xf32>
    %131 = tpu.concatenate %129, %130 in 0 : vector<1x128xf32>, vector<1x128xf32> -> vector<2x128xf32>
    %cst_25 = arith.constant dense<0.000000e+00> : vector<2x128xf32>
    %132 = tpu.matmul %128, %6, %cst_25 {dimension_numbers = #tpu.dot_dimension_numbers<[1], [0], [0], [1], [0, 0, 1, 1], [], []>} : vector<2x32xf32>, vector<32x128xf32>, vector<2x128xf32> -> vector<2x128xf32>
    %133 = arith.addf %131, %132 : vector<2x128xf32>
    %134 = vector.extract_strided_slice %133 {offsets = [0, 0], sizes = [2, 32], strides = [1, 1]} : vector<2x128xf32> to vector<2x32xf32>
    %135 = arith.negf %134 : vector<2x32xf32>
    %136 = math.exp %135 : vector<2x32xf32>
    %cst_26 = arith.constant 1.000000e+00 : f32
    %137 = vector.broadcast %cst_26 : f32 to vector<2x32xf32>
    %138 = arith.addf %137, %136 : vector<2x32xf32>
    %139 = arith.divf %137, %138 : vector<2x32xf32>
    %140 = vector.extract_strided_slice %133 {offsets = [0, 32], sizes = [2, 32], strides = [1, 1]} : vector<2x128xf32> to vector<2x32xf32>
    %141 = arith.negf %140 : vector<2x32xf32>
    %142 = math.exp %141 : vector<2x32xf32>
    %cst_27 = arith.constant 1.000000e+00 : f32
    %143 = vector.broadcast %cst_27 : f32 to vector<2x32xf32>
    %144 = arith.addf %143, %142 : vector<2x32xf32>
    %145 = arith.divf %143, %144 : vector<2x32xf32>
    %146 = vector.extract_strided_slice %133 {offsets = [0, 64], sizes = [2, 32], strides = [1, 1]} : vector<2x128xf32> to vector<2x32xf32>
    %147 = math.tanh %146 : vector<2x32xf32>
    %148 = vector.extract_strided_slice %133 {offsets = [0, 96], sizes = [2, 32], strides = [1, 1]} : vector<2x128xf32> to vector<2x32xf32>
    %149 = arith.negf %148 : vector<2x32xf32>
    %150 = math.exp %149 : vector<2x32xf32>
    %cst_28 = arith.constant 1.000000e+00 : f32
    %151 = vector.broadcast %cst_28 : f32 to vector<2x32xf32>
    %152 = arith.addf %151, %150 : vector<2x32xf32>
    %153 = arith.divf %151, %152 : vector<2x32xf32>
    %154 = arith.mulf %145, %126 : vector<2x32xf32>
    %155 = arith.mulf %139, %147 : vector<2x32xf32>
    %156 = arith.addf %154, %155 : vector<2x32xf32>
    %157 = math.tanh %156 : vector<2x32xf32>
    %158 = arith.mulf %153, %157 : vector<2x32xf32>
    %159 = vector.extract_strided_slice %5 {offsets = [5, 0], sizes = [1, 128], strides = [1, 1]} : vector<16x128xf32> to vector<1x128xf32>
    %160 = vector.extract_strided_slice %5 {offsets = [13, 0], sizes = [1, 128], strides = [1, 1]} : vector<16x128xf32> to vector<1x128xf32>
    %161 = tpu.concatenate %159, %160 in 0 : vector<1x128xf32>, vector<1x128xf32> -> vector<2x128xf32>
    %cst_29 = arith.constant dense<0.000000e+00> : vector<2x128xf32>
    %162 = tpu.matmul %158, %6, %cst_29 {dimension_numbers = #tpu.dot_dimension_numbers<[1], [0], [0], [1], [0, 0, 1, 1], [], []>} : vector<2x32xf32>, vector<32x128xf32>, vector<2x128xf32> -> vector<2x128xf32>
    %163 = arith.addf %161, %162 : vector<2x128xf32>
    %164 = vector.extract_strided_slice %163 {offsets = [0, 0], sizes = [2, 32], strides = [1, 1]} : vector<2x128xf32> to vector<2x32xf32>
    %165 = arith.negf %164 : vector<2x32xf32>
    %166 = math.exp %165 : vector<2x32xf32>
    %cst_30 = arith.constant 1.000000e+00 : f32
    %167 = vector.broadcast %cst_30 : f32 to vector<2x32xf32>
    %168 = arith.addf %167, %166 : vector<2x32xf32>
    %169 = arith.divf %167, %168 : vector<2x32xf32>
    %170 = vector.extract_strided_slice %163 {offsets = [0, 32], sizes = [2, 32], strides = [1, 1]} : vector<2x128xf32> to vector<2x32xf32>
    %171 = arith.negf %170 : vector<2x32xf32>
    %172 = math.exp %171 : vector<2x32xf32>
    %cst_31 = arith.constant 1.000000e+00 : f32
    %173 = vector.broadcast %cst_31 : f32 to vector<2x32xf32>
    %174 = arith.addf %173, %172 : vector<2x32xf32>
    %175 = arith.divf %173, %174 : vector<2x32xf32>
    %176 = vector.extract_strided_slice %163 {offsets = [0, 64], sizes = [2, 32], strides = [1, 1]} : vector<2x128xf32> to vector<2x32xf32>
    %177 = math.tanh %176 : vector<2x32xf32>
    %178 = vector.extract_strided_slice %163 {offsets = [0, 96], sizes = [2, 32], strides = [1, 1]} : vector<2x128xf32> to vector<2x32xf32>
    %179 = arith.negf %178 : vector<2x32xf32>
    %180 = math.exp %179 : vector<2x32xf32>
    %cst_32 = arith.constant 1.000000e+00 : f32
    %181 = vector.broadcast %cst_32 : f32 to vector<2x32xf32>
    %182 = arith.addf %181, %180 : vector<2x32xf32>
    %183 = arith.divf %181, %182 : vector<2x32xf32>
    %184 = arith.mulf %175, %156 : vector<2x32xf32>
    %185 = arith.mulf %169, %177 : vector<2x32xf32>
    %186 = arith.addf %184, %185 : vector<2x32xf32>
    %187 = math.tanh %186 : vector<2x32xf32>
    %188 = arith.mulf %183, %187 : vector<2x32xf32>
    %189 = vector.extract_strided_slice %5 {offsets = [6, 0], sizes = [1, 128], strides = [1, 1]} : vector<16x128xf32> to vector<1x128xf32>
    %190 = vector.extract_strided_slice %5 {offsets = [14, 0], sizes = [1, 128], strides = [1, 1]} : vector<16x128xf32> to vector<1x128xf32>
    %191 = tpu.concatenate %189, %190 in 0 : vector<1x128xf32>, vector<1x128xf32> -> vector<2x128xf32>
    %cst_33 = arith.constant dense<0.000000e+00> : vector<2x128xf32>
    %192 = tpu.matmul %188, %6, %cst_33 {dimension_numbers = #tpu.dot_dimension_numbers<[1], [0], [0], [1], [0, 0, 1, 1], [], []>} : vector<2x32xf32>, vector<32x128xf32>, vector<2x128xf32> -> vector<2x128xf32>
    %193 = arith.addf %191, %192 : vector<2x128xf32>
    %194 = vector.extract_strided_slice %193 {offsets = [0, 0], sizes = [2, 32], strides = [1, 1]} : vector<2x128xf32> to vector<2x32xf32>
    %195 = arith.negf %194 : vector<2x32xf32>
    %196 = math.exp %195 : vector<2x32xf32>
    %cst_34 = arith.constant 1.000000e+00 : f32
    %197 = vector.broadcast %cst_34 : f32 to vector<2x32xf32>
    %198 = arith.addf %197, %196 : vector<2x32xf32>
    %199 = arith.divf %197, %198 : vector<2x32xf32>
    %200 = vector.extract_strided_slice %193 {offsets = [0, 32], sizes = [2, 32], strides = [1, 1]} : vector<2x128xf32> to vector<2x32xf32>
    %201 = arith.negf %200 : vector<2x32xf32>
    %202 = math.exp %201 : vector<2x32xf32>
    %cst_35 = arith.constant 1.000000e+00 : f32
    %203 = vector.broadcast %cst_35 : f32 to vector<2x32xf32>
    %204 = arith.addf %203, %202 : vector<2x32xf32>
    %205 = arith.divf %203, %204 : vector<2x32xf32>
    %206 = vector.extract_strided_slice %193 {offsets = [0, 64], sizes = [2, 32], strides = [1, 1]} : vector<2x128xf32> to vector<2x32xf32>
    %207 = math.tanh %206 : vector<2x32xf32>
    %208 = vector.extract_strided_slice %193 {offsets = [0, 96], sizes = [2, 32], strides = [1, 1]} : vector<2x128xf32> to vector<2x32xf32>
    %209 = arith.negf %208 : vector<2x32xf32>
    %210 = math.exp %209 : vector<2x32xf32>
    %cst_36 = arith.constant 1.000000e+00 : f32
    %211 = vector.broadcast %cst_36 : f32 to vector<2x32xf32>
    %212 = arith.addf %211, %210 : vector<2x32xf32>
    %213 = arith.divf %211, %212 : vector<2x32xf32>
    %214 = arith.mulf %205, %186 : vector<2x32xf32>
    %215 = arith.mulf %199, %207 : vector<2x32xf32>
    %216 = arith.addf %214, %215 : vector<2x32xf32>
    %217 = math.tanh %216 : vector<2x32xf32>
    %218 = arith.mulf %213, %217 : vector<2x32xf32>
    %219 = vector.extract_strided_slice %5 {offsets = [7, 0], sizes = [1, 128], strides = [1, 1]} : vector<16x128xf32> to vector<1x128xf32>
    %220 = vector.extract_strided_slice %5 {offsets = [15, 0], sizes = [1, 128], strides = [1, 1]} : vector<16x128xf32> to vector<1x128xf32>
    %221 = tpu.concatenate %219, %220 in 0 : vector<1x128xf32>, vector<1x128xf32> -> vector<2x128xf32>
    %cst_37 = arith.constant dense<0.000000e+00> : vector<2x128xf32>
    %222 = tpu.matmul %218, %6, %cst_37 {dimension_numbers = #tpu.dot_dimension_numbers<[1], [0], [0], [1], [0, 0, 1, 1], [], []>} : vector<2x32xf32>, vector<32x128xf32>, vector<2x128xf32> -> vector<2x128xf32>
    %223 = arith.addf %221, %222 : vector<2x128xf32>
    %224 = vector.extract_strided_slice %223 {offsets = [0, 0], sizes = [2, 32], strides = [1, 1]} : vector<2x128xf32> to vector<2x32xf32>
    %225 = arith.negf %224 : vector<2x32xf32>
    %226 = math.exp %225 : vector<2x32xf32>
    %cst_38 = arith.constant 1.000000e+00 : f32
    %227 = vector.broadcast %cst_38 : f32 to vector<2x32xf32>
    %228 = arith.addf %227, %226 : vector<2x32xf32>
    %229 = arith.divf %227, %228 : vector<2x32xf32>
    %230 = vector.extract_strided_slice %223 {offsets = [0, 32], sizes = [2, 32], strides = [1, 1]} : vector<2x128xf32> to vector<2x32xf32>
    %231 = arith.negf %230 : vector<2x32xf32>
    %232 = math.exp %231 : vector<2x32xf32>
    %cst_39 = arith.constant 1.000000e+00 : f32
    %233 = vector.broadcast %cst_39 : f32 to vector<2x32xf32>
    %234 = arith.addf %233, %232 : vector<2x32xf32>
    %235 = arith.divf %233, %234 : vector<2x32xf32>
    %236 = vector.extract_strided_slice %223 {offsets = [0, 64], sizes = [2, 32], strides = [1, 1]} : vector<2x128xf32> to vector<2x32xf32>
    %237 = math.tanh %236 : vector<2x32xf32>
    %238 = vector.extract_strided_slice %223 {offsets = [0, 96], sizes = [2, 32], strides = [1, 1]} : vector<2x128xf32> to vector<2x32xf32>
    %239 = arith.negf %238 : vector<2x32xf32>
    %240 = math.exp %239 : vector<2x32xf32>
    %cst_40 = arith.constant 1.000000e+00 : f32
    %241 = vector.broadcast %cst_40 : f32 to vector<2x32xf32>
    %242 = arith.addf %241, %240 : vector<2x32xf32>
    %243 = arith.divf %241, %242 : vector<2x32xf32>
    %244 = arith.mulf %235, %216 : vector<2x32xf32>
    %245 = arith.mulf %229, %237 : vector<2x32xf32>
    %246 = arith.addf %244, %245 : vector<2x32xf32>
    %247 = math.tanh %246 : vector<2x32xf32>
    %248 = arith.mulf %243, %247 : vector<2x32xf32>
    %249 = vector.extract_strided_slice %38 {offsets = [0, 0], sizes = [1, 32], strides = [1, 1]} : vector<2x32xf32> to vector<1x32xf32>
    %250 = vector.extract_strided_slice %68 {offsets = [0, 0], sizes = [1, 32], strides = [1, 1]} : vector<2x32xf32> to vector<1x32xf32>
    %251 = vector.extract_strided_slice %98 {offsets = [0, 0], sizes = [1, 32], strides = [1, 1]} : vector<2x32xf32> to vector<1x32xf32>
    %252 = vector.extract_strided_slice %128 {offsets = [0, 0], sizes = [1, 32], strides = [1, 1]} : vector<2x32xf32> to vector<1x32xf32>
    %253 = vector.extract_strided_slice %158 {offsets = [0, 0], sizes = [1, 32], strides = [1, 1]} : vector<2x32xf32> to vector<1x32xf32>
    %254 = vector.extract_strided_slice %188 {offsets = [0, 0], sizes = [1, 32], strides = [1, 1]} : vector<2x32xf32> to vector<1x32xf32>
    %255 = vector.extract_strided_slice %218 {offsets = [0, 0], sizes = [1, 32], strides = [1, 1]} : vector<2x32xf32> to vector<1x32xf32>
    %256 = vector.extract_strided_slice %248 {offsets = [0, 0], sizes = [1, 32], strides = [1, 1]} : vector<2x32xf32> to vector<1x32xf32>
    %257 = vector.extract_strided_slice %38 {offsets = [1, 0], sizes = [1, 32], strides = [1, 1]} : vector<2x32xf32> to vector<1x32xf32>
    %258 = vector.extract_strided_slice %68 {offsets = [1, 0], sizes = [1, 32], strides = [1, 1]} : vector<2x32xf32> to vector<1x32xf32>
    %259 = vector.extract_strided_slice %98 {offsets = [1, 0], sizes = [1, 32], strides = [1, 1]} : vector<2x32xf32> to vector<1x32xf32>
    %260 = vector.extract_strided_slice %128 {offsets = [1, 0], sizes = [1, 32], strides = [1, 1]} : vector<2x32xf32> to vector<1x32xf32>
    %261 = vector.extract_strided_slice %158 {offsets = [1, 0], sizes = [1, 32], strides = [1, 1]} : vector<2x32xf32> to vector<1x32xf32>
    %262 = vector.extract_strided_slice %188 {offsets = [1, 0], sizes = [1, 32], strides = [1, 1]} : vector<2x32xf32> to vector<1x32xf32>
    %263 = vector.extract_strided_slice %218 {offsets = [1, 0], sizes = [1, 32], strides = [1, 1]} : vector<2x32xf32> to vector<1x32xf32>
    %264 = vector.extract_strided_slice %248 {offsets = [1, 0], sizes = [1, 32], strides = [1, 1]} : vector<2x32xf32> to vector<1x32xf32>
    %265 = tpu.concatenate %249, %250, %251, %252, %253, %254, %255, %256, %257, %258, %259, %260, %261, %262, %263, %264 in 0 : vector<1x32xf32>, vector<1x32xf32>, vector<1x32xf32>, vector<1x32xf32>, vector<1x32xf32>, vector<1x32xf32>, vector<1x32xf32>, vector<1x32xf32>, vector<1x32xf32>, vector<1x32xf32>, vector<1x32xf32>, vector<1x32xf32>, vector<1x32xf32>, vector<1x32xf32>, vector<1x32xf32>, vector<1x32xf32> -> vector<16x32xf32>
    %c0_41 = arith.constant 0 : index
    %c0_42 = arith.constant 0 : index
    %266 = vector.load %arg4[%c0_41, %c0_42] : memref<32x128xf32, #tpu.memory_space<vmem>>, vector<32x128xf32>
    %cst_43 = arith.constant dense<0.000000e+00> : vector<16x128xf32>
    %267 = tpu.matmul %265, %266, %cst_43 {dimension_numbers = #tpu.dot_dimension_numbers<[1], [0], [0], [1], [0, 0, 1, 1], [], []>} : vector<16x32xf32>, vector<32x128xf32>, vector<16x128xf32> -> vector<16x128xf32>
    %c0_44 = arith.constant 0 : index
    %c0_45 = arith.constant 0 : index
    %268 = vector.load %arg5[%c0_44, %c0_45] : memref<1x128xf32, #tpu.memory_space<vmem>>, vector<1x128xf32>
    %269 = vector.broadcast %268 : vector<1x128xf32> to vector<16x128xf32>
    %270 = arith.addf %267, %269 : vector<16x128xf32>
    %cst_46 = arith.constant 5.000000e-01 : f32
    %271 = vector.broadcast %cst_46 : f32 to vector<16x128xf32>
    %272 = arith.mulf %271, %270 : vector<16x128xf32>
    %cst_47 = arith.constant 0.707106769 : f32
    %273 = vector.broadcast %cst_47 : f32 to vector<16x128xf32>
    %274 = arith.mulf %270, %273 : vector<16x128xf32>
    %275 = math.erf %274 : vector<16x128xf32>
    %cst_48 = arith.constant 1.000000e+00 : f32
    %276 = vector.broadcast %cst_48 : f32 to vector<16x128xf32>
    %277 = arith.addf %276, %275 : vector<16x128xf32>
    %278 = arith.mulf %272, %277 : vector<16x128xf32>
    %c0_49 = arith.constant 0 : index
    %c0_50 = arith.constant 0 : index
    %279 = vector.load %arg6[%c0_49, %c0_50] : memref<128x128xf32, #tpu.memory_space<vmem>>, vector<128x128xf32>
    %cst_51 = arith.constant dense<0.000000e+00> : vector<16x128xf32>
    %280 = tpu.matmul %278, %279, %cst_51 {dimension_numbers = #tpu.dot_dimension_numbers<[1], [0], [0], [1], [0, 0, 1, 1], [], []>} : vector<16x128xf32>, vector<128x128xf32>, vector<16x128xf32> -> vector<16x128xf32>
    %c0_52 = arith.constant 0 : index
    %c0_53 = arith.constant 0 : index
    %281 = vector.load %arg7[%c0_52, %c0_53] : memref<1x128xf32, #tpu.memory_space<vmem>>, vector<1x128xf32>
    %282 = vector.broadcast %281 : vector<1x128xf32> to vector<16x128xf32>
    %283 = arith.addf %280, %282 : vector<16x128xf32>
    %c0_54 = arith.constant 0 : index
    %c0_55 = arith.constant 0 : index
    %284 = vector.load %arg8[%c0_54, %c0_55] : memref<16x128xf32, #tpu.memory_space<vmem>>, vector<16x128xf32>
    tpu.vector_store %arg8[%c0_54, %c0_55], %283 {strides = array<i32>} : memref<16x128xf32, #tpu.memory_space<vmem>>, vector<16x128xf32>,
    return
  }
}

</mosaic_0001>

<bundles_post_ra>
// kernel: recurrent_block_forward.1
= control target key start
LH: loop header
LB: loop body
LE: loop exit
PB: predicated region body
PF: predicated region fallthrough
CT: control target
= control target key end

     0   :  { %13 = vsyncpa [#allocation3], 0  ;;  %s2115_s0 = inlined_call_operand.hbm [shape: f32[16,32], index: 0, kind: input, shape index: {}]   ;;  %s2116_s1 = inlined_call_operand.hbm [shape: f32[32,128], index: 1, kind: input, shape index: {}]   ;;  %s2117_s2 = inlined_call_operand.hbm [shape: f32[32,128], index: 2, kind: input, shape index: {}]   ;;  %s2118_s3 = inlined_call_operand.vmem [shape: f32[1,128], index: 3, kind: input, shape index: {}]   ;;  %s2119_s4 = inlined_call_operand.hbm [shape: f32[32,128], index: 4, kind: input, shape index: {}]   ;;  %s2120_s5 = inlined_call_operand.vmem [shape: f32[1,128], index: 5, kind: input, shape index: {}]   ;;  %s2121_s6 = inlined_call_operand.hbm [shape: f32[128,128], index: 6, kind: input, shape index: {}]   ;;  %s2122_s7 = inlined_call_operand.vmem [shape: f32[1,128], index: 7, kind: input, shape index: {}]   ;;  %s2123_s8 = inlined_call_operand.vmem [shape: f32[16,128], index: 8, kind: output, shape index: {}]  }
   0x1   :  { %14 = vsyncpa [#allocation5], 0 }
   0x2   :  { %15 = vsyncpa [#allocation8], 0  ;;  %s1824_s27 = smov [#allocation4]   ;;  %s1825_s29 = smov [#allocation7]  }
   0x3   :  { %s33_s28 = sshll.u32 %s1824_s27, 4  ;;  %s59_s30 = sshll.u32 %s1825_s29, 4  ;;  %s34_s28 = int_to_ptr.vmem [resolvable:$true] %s33_s28  ;;  %s1881_s30 = int_to_ptr.vmem [resolvable:$true] %s59_s30 }
   0x4   :  { %s1708_s11 = scalar_lea.hbm %s2116_s1, 512 }
   0x5   :  { %p1709_p0 = scmp.ne.s32.totalorder %s2116_s1, %s1708_s11  ;;  %p1712_p1 = scmp.lt.u32.totalorder %s1708_s11, %s2116_s1 }
   0x7   :  { %p1714_p2 = pnand %p1712_p1, %p1709_p0 }
   0x9   :  { %1717 = shalt.err (!%p1714_p2)
}
   0xa   :  { %s1718_s16 = scalar_lea.vmem %s34_s28, 512  ;;  %p1723_p4 = scmp.lt.s32.totalorder %s34_s28, %s34_s28 }
   0xb   :  { %p1719_p3 = scmp.ne.s32.totalorder %s34_s28, %s1718_s16  ;;  %p1724_p5 = scmp.lt.s32.totalorder %s1718_s16, %s1718_s16 }
   0xd   :  { %p1725_p6 = por %p1724_p5, %p1723_p4 }
   0xf   :  { %p1726_p7 = pnand %p1725_p6, %p1719_p3 }
  0x11   :  { %1729 = shalt.err (!%p1726_p7)
}
  0x12   :  { %s1826_s17 = smov 128   ;;  %s1827_s18 = smov 8  }
  0x13   :  { %39 = dma.hbm_to_vmem [thread:$0]  %s2116_s1, 512, %s34_s28, [#allocation5], %s1826_s17, %s1826_s17, %s1827_s18  }
  0x14   :  { %s1730_s23 = scalar_lea.hbm %s2119_s4, 512 }
  0x15   :  { %p1731_p8 = scmp.ne.s32.totalorder %s2119_s4, %s1730_s23  ;;  %p1734_p9 = scmp.lt.u32.totalorder %s1730_s23, %s2119_s4 }
  0x17   :  { %p1736_p10 = pnand %p1734_p9, %p1731_p8 }
  0x19   :  { %1739 = shalt.err (!%p1736_p10)
}
  0x1a   :  { %s1740_s29 = scalar_lea.vmem %s1881_s30, 512  ;;  %p1745_p12 = scmp.lt.s32.totalorder %s1881_s30, %s1881_s30 }
  0x1b   :  { %p1741_p11 = scmp.ne.s32.totalorder %s1881_s30, %s1740_s29  ;;  %p1746_p13 = scmp.lt.s32.totalorder %s1740_s29, %s1740_s29 }
  0x1d   :  { %p1747_p0 = por %p1746_p13, %p1745_p12 }
  0x1f   :  { %p1748_p1 = pnand %p1747_p0, %p1741_p11 }
  0x21   :  { %1751 = shalt.err (!%p1748_p1)
}
  0x22   :  { %65 = dma.hbm_to_vmem [thread:$0]  %s2119_s4, 512, %s1881_s30, [#allocation8], %s1826_s17, %s1826_s17, %s1827_s18  }
  0x23   :  { %s1828_s9 = smov [#allocation2]   ;;  %s1829_s11 = smov [#allocation6]  }
  0x24   :  { %s21_s10 = sshll.u32 %s1828_s9, 4  ;;  %s45_s12 = sshll.u32 %s1829_s11, 4  ;;  %s22_s10 = int_to_ptr.vmem [resolvable:$true] %s21_s10  ;;  %s1918_s12 = int_to_ptr.vmem [resolvable:$true] %s45_s12 }
  0x25   :  { %s1752_s15 = scalar_lea.hbm %s2115_s0, 256 }
  0x26   :  { %p1753_p2 = scmp.ne.s32.totalorder %s2115_s0, %s1752_s15  ;;  %p1756_p3 = scmp.lt.u32.totalorder %s1752_s15, %s2115_s0 }
  0x28   :  { %p1758_p4 = pnand %p1756_p3, %p1753_p2 }
  0x2a   :  { %1761 = shalt.err (!%p1758_p4)
}
  0x2b   :  { %s1762_s4 = scalar_lea.vmem %s22_s10, 256  ;;  %p1767_p6 = scmp.lt.s32.totalorder %s22_s10, %s22_s10 }
  0x2c   :  { %p1763_p5 = scmp.ne.s32.totalorder %s22_s10, %s1762_s4  ;;  %p1768_p7 = scmp.lt.s32.totalorder %s1762_s4, %s1762_s4 }
  0x2e   :  { %p1769_p8 = por %p1768_p7, %p1767_p6 }
  0x30   :  { %p1770_p9 = pnand %p1769_p8, %p1763_p5 }
  0x32   :  { %1773 = shalt.err (!%p1770_p9)
}
  0x33   :  { %27 = dma.hbm_to_vmem [thread:$0]  %s2115_s0, 256, %s22_s10, [#allocation3], %s1826_s17, %s1826_s17, %s1827_s18  }
  0x34   :  { %s1774_s25 = scalar_lea.hbm %s2117_s2, 512 }
  0x35   :  { %p1775_p10 = scmp.ne.s32.totalorder %s2117_s2, %s1774_s25  ;;  %p1778_p11 = scmp.lt.u32.totalorder %s1774_s25, %s2117_s2 }
  0x37   :  { %p1780_p12 = pnand %p1778_p11, %p1775_p10 }
  0x39   :  { %1783 = shalt.err (!%p1780_p12)
}
  0x3a   :  { %s1784_s28 = scalar_lea.vmem %s1918_s12, 512  ;;  %p1789_p0 = scmp.lt.s32.totalorder %s1918_s12, %s1918_s12 }
  0x3b   :  { %p1785_p13 = scmp.ne.s32.totalorder %s1918_s12, %s1784_s28  ;;  %p1790_p1 = scmp.lt.s32.totalorder %s1784_s28, %s1784_s28 }
  0x3d   :  { %p1791_p2 = por %p1790_p1, %p1789_p0 }
  0x3f   :  { %p1792_p3 = pnand %p1791_p2, %p1785_p13 }
  0x41   :  { %1795 = shalt.err (!%p1792_p3)
}
  0x42   :  { %51 = dma.hbm_to_vmem [thread:$0]  %s2117_s2, 512, %s1918_s12, [#allocation5], %s1826_s17, %s1826_s17, %s1827_s18  }
  0x43   :  { %s1830_s10 = smov [#allocation9]   ;;  %s1796_s15 = scalar_lea.hbm %s2121_s6, 2048 }
  0x44   :  { %s73_s11 = sshll.u32 %s1830_s10, 4  ;;  %p1797_p4 = scmp.ne.s32.totalorder %s2121_s6, %s1796_s15  ;;  %s74_s11 = int_to_ptr.vmem [resolvable:$true] %s73_s11 }
  0x45   :  { %p1800_p5 = scmp.lt.u32.totalorder %s1796_s15, %s2121_s6 }
  0x47   :  { %p1802_p6 = pnand %p1800_p5, %p1797_p4 }
  0x49   :  { %1805 = shalt.err (!%p1802_p6)
}
  0x4a   :  { %s1806_s4 = scalar_lea.vmem %s74_s11, 2048  ;;  %p1811_p8 = scmp.lt.s32.totalorder %s74_s11, %s74_s11 }
  0x4b   :  { %p1807_p7 = scmp.ne.s32.totalorder %s74_s11, %s1806_s4  ;;  %p1812_p9 = scmp.lt.s32.totalorder %s1806_s4, %s1806_s4 }
  0x4d   :  { %p1813_p10 = por %p1812_p9, %p1811_p8 }
  0x4f   :  { %p1814_p11 = pnand %p1813_p10, %p1807_p7 }
  0x51   :  { %1817 = shalt.err (!%p1814_p11)
}
  0x52   :  { %79 = dma.hbm_to_vmem [thread:$0]  %s2121_s6, 2048, %s74_s11, [#allocation8], %s1826_s17, %s1826_s17, %s1827_s18  }
  0x53   :  { %1818 = dma.done.wait [#allocation3], 256  }
  0x54   :  { %1819 = vsyncadd [#allocation3], 4294967040 }
  0x55   :  { %1820 = dma.done.wait [#allocation5], 1024  }
  0x56   :  { %1821 = vsyncadd [#allocation5], 4294966272 }
  0x57   :  { %1822 = dma.done.wait [#allocation8], 2560  }
  0x58   :  { %1823 = vsyncadd [#allocation8], 4294964736  ;;  %v1831_v0 = vmov 0.0|0.0   ;;  %vm1832_vm0 = vmmov 0   ;;  %v1833_v1 = vmov 0.0   ;;  %vm110_vm1 = vcmask 261120  }
  0x59   :  { %1558 = vmatprep.subr.bf16.mxu0 %v1831_v0  ;;  %1439 = vmatprep.mubr.msk.f32.mxu0 %vm1832_vm0, %v1833_v1  ;;  %v99_v2 = vld [vmem:[#allocation4] sm:$0xff]  ;;  %v100_v3 = vld [vmem:[#allocation4 + $0x8] sm:$0xff]  ;;  %v101_v4 = vld [vmem:[#allocation4 + $0x10] sm:$0xff]  ;;  %vm199_vm2 = vcmask 1040384   ;;  %s1835_s18 = smov 32   ;;  %vm1063_vm3 = vcmask 1041408  }
  0x5a   :  { %v1532_v5 = vpack.c.bf16 %v100_v3, %v99_v2  ;;  %v102_v6 = vld [vmem:[#allocation4 + $0x18] sm:$0xff]  ;;  %v97_v7 = vld [vmem:[#allocation2] sm:$0xff]  ;;  %v192_v9 = vld [vmem:[#allocation6] sm:$0xff]  ;;  %vm1065_vm4 = vcmask 1042432   ;;  %vm1067_vm5 = vcmask 1043456   ;;  %vm1069_vm6 = vcmask 1044480  }
  0x5b   :  { %v1536_v8 = vpack.c.bf16 %v102_v6, %v101_v4  ;;  %1395 = vmatprep.mubr.msk.f32.mxu1 %vm110_vm1, %v97_v7  ;;  %v193_v10 = vld [vmem:[#allocation6 + $0x8] sm:$0xff]  ;;  %v194_v12 = vld [vmem:[#allocation6 + $0x10] sm:$0xff]  ;;  %v195_v13 = vld [vmem:[#allocation6 + $0x18] sm:$0xff]  ;;  %vm1071_vm7 = vcmask 1045504   ;;  %vm1073_vm8 = vcmask 1046528  }
  0x5c   :  { %1533 = vmatprep.subr.bf16.mxu1 %v1532_v5  ;;  %v1974_v11 = vpack.c.bf16 %v193_v10, %v192_v9  ;;  %v1978_v14 = vpack.c.bf16 %v195_v13, %v194_v12  ;;  %v98_v15 = vld [vmem:[#allocation2 + $0x8] sm:$0xff]  ;;  %v1295_v16 = vld [vmem:[%s2118_s3] ss:$0 sm:$0xff]  ;;  %s1834_s3 = smov 64  }
  0x5d   :  { %1535 = vmatpush3.bf16.msra.mxu1 %v1532_v5 }
  0x5e   :  { %1537 = vmatprep.subr.bf16.mxu1 %v1536_v8  ;;  %1560 = vmatpush3.bf16.msra.mxu0 %v1974_v11 }
  0x5f   :  { %1561 = vmatprep.subr.bf16.mxu0 %v1831_v0 }
  0x61   :  { %1539 = vmatpush3.bf16.msra.mxu1 %v1536_v8 }
  0x62   :  { %1540 = vmatprep.subr.bf16.mxu1 %v1831_v0  ;;  %1563 = vmatpush3.bf16.msra.mxu0 %v1978_v14 }
  0x63   :  { %1570 = vmatprep.subr.bf16.mxu0 %v1831_v0 }
  0x64   :  { %1396 = vmatmul.mubr.msk.f32.vlgmr.msra.gmra.mrb[0].mxu1 %vm110_vm1, %v98_v15 }
  0x65   :  { %1542 = vmatpush3.bf16.msra.mxu1 %v1974_v11  ;;  %1406 = vmatprep.mubr.msk.f32.mxu1 %vm1832_vm0, %v1833_v1 }
  0x66   :  { %1543 = vmatprep.subr.bf16.mxu1 %v1831_v0 }
  0x69   :  { %1545 = vmatpush3.bf16.msra.mxu1 %v1978_v14 }
  0x6a   :  { %1546 = vmatprep.subr.bf16.mxu1 %v1831_v0 }
  0x6c   :  { %1407 = vmatmul.mubr.f32.vlgmr.msra.gmra.mrb[2].mxu1 %v1833_v1 }
  0x6d   :  { %1548 = vmatpush3.bf16.msra.mxu1 %v1974_v11  ;;  %1417 = vmatprep.mubr.msk.f32.mxu1 %vm1832_vm0, %v1833_v1 }
  0x6e   :  { %1549 = vmatprep.subr.bf16.mxu1 %v1831_v0 }
  0x71   :  { %1551 = vmatpush3.bf16.msra.mxu1 %v1978_v14 }
  0x72   :  { %1552 = vmatprep.subr.bf16.mxu1 %v1831_v0 }
 0x137   :  { %v1397_v17 = vpop.f32.mrb[0].mxu1 }
 0x138   :  { %v189_v18 = vadd.f32 %v1397_v17, %v1295_v16  ;;  %v183_v19 = vpop.f32.mrb[1].mxu1 }
 0x139   :  { %v184_v20 = vadd.f32 %v1295_v16, %v183_v19 }
 0x13a   :  { %v197_v21 = vrot.slane %v189_v18, 7  ;;  %v405_v22 = vrot.slane %v189_v18, 1  ;;  %v510_v23 = vrot.slane %v189_v18, 2  ;;  %v615_v24 = vrot.slane %v189_v18, 3 }
 0x13b   :  { %v300_v25 = vrot.slane %v184_v20, 1  ;;  %v403_v26 = vrot.slane %v184_v20, 2  ;;  %v508_v27 = vrot.slane %v184_v20, 3  ;;  %v613_v28 = vrot.slane %v184_v20, 4 }
 0x13c   :  { %v200_v29 = vsel %vm199_vm2, %v184_v20, %v197_v21  ;;  %v718_v30 = vrot.slane %v184_v20, 5  ;;  %v720_v31 = vrot.slane %v189_v18, 4  ;;  %v823_v32 = vrot.slane %v184_v20, 6 }
 0x13d   :  { %v302_v33 = vsel %vm199_vm2, %v300_v25, %v189_v18  ;;  %v2003_v34 = vsel %vm199_vm2, %v403_v26, %v405_v22  ;;  %v2006_v35 = vsel %vm199_vm2, %v508_v27, %v510_v23  ;;  %v2009_v36 = vsel %vm199_vm2, %v613_v28, %v615_v24 }
 0x13e   :  { %v2012_v37 = vsel %vm199_vm2, %v718_v30, %v720_v31  ;;  %v825_v38 = vrot.slane %v189_v18, 5  ;;  %v928_v39 = vrot.slane %v184_v20, 7  ;;  %v930_v40 = vrot.slane %v189_v18, 6 }
 0x13f   :  { %v270_v41 = vpop.f32.mrb[2].mxu1 }
 0x140   :  { %v274_v42 = vadd.f32 %v270_v41, %v200_v29  ;;  %v1408_v43 = vpop.f32.mrb[3].mxu1  ;;  %v2015_v44 = vsel %vm199_vm2, %v823_v32, %v825_v38  ;;  %v2018_v45 = vsel %vm199_vm2, %v928_v39, %v930_v40 }
 0x142   :  { %1640 = vtanh.f32 %v274_v42  ;;  %v1298_v47 = vmul.f32 -1.442695, %v274_v42 }
 0x144   :  { %1642 = vpow2.f32 %v1298_v47 }
 0x14c   :  { %v1641_v46 = vpop.eup %1640 }
 0x14d   :  { %284 = vrot.lane.b32.xlu0 %v1641_v46, %s1834_s3 }
 0x14e   :  { %v1643_v48 = vpop.eup %1642 }
 0x14f   :  { %v278_v49 = vadd.f32 1.0, %v1643_v48 }
 0x151   :  { %1644 = vrcp.f32 %v278_v49 }
 0x15b   :  { %v1645_v50 = vpop.eup %1644 }
 0x15c   :  { %v282_v53 = vmul.f32 0.0, %v1645_v50 }
 0x1bf   :  { %v285_v51 = vpop.permute.xlu0 %284 }
 0x1c0   :  { %v287_v52 = vmul.f32 %v1645_v50, %v285_v51 }
 0x1c2   :  { %289 = vrot.lane.b32.xlu0 %v287_v52, %s1835_s18 }
 0x234   :  { %v290_v54 = vpop.permute.xlu0 %289 }
 0x235   :  { %v292_v55 = vadd.f32 %v290_v54, %v282_v53 }
 0x237   :  { %1646 = vtanh.f32 %v292_v55 }
 0x241   :  { %v1647_v56 = vpop.eup %1646 }
 0x242   :  { %295 = vrot.lane.b32.xlu1 %v1647_v56, %s1834_s3 }
 0x2b4   :  { %v296_v57 = vpop.permute.xlu1 %295 }
 0x2b5   :  { %v2023_v58 = vmul.f32 %v1645_v50, %v296_v57 }
 0x2b7   :  { %304 = vrot.lane.b32.xlu1 %v2023_v58, %s1835_s18 }
 0x329   :  { %v305_v59 = vpop.permute.xlu1 %304 }
 0x32a   :  { %1418 = vmatmul.mubr.msk.f32.vlgmr.msra.gmra.mrb[4].mxu1 %vm110_vm1, %v305_v59 }
 0x32b   :  { %1554 = vmatpush3.bf16.msra.mxu1 %v1974_v11  ;;  %1428 = vmatprep.mubr.msk.f32.mxu1 %vm1832_vm0, %v1833_v1 }
 0x32c   :  { %1555 = vmatprep.subr.bf16.mxu1 %v1831_v0 }
 0x32f   :  { %1557 = vmatpush3.bf16.msra.mxu1 %v1978_v14 }
 0x330   :  { %1564 = vmatprep.subr.bf16.mxu1 %v1831_v0 }
 0x3fd   :  { %v374_v60 = vpop.f32.mrb[4].mxu1 }
 0x3fe   :  { %v378_v61 = vadd.f32 %v374_v60, %v302_v33  ;;  %v1419_v62 = vpop.f32.mrb[5].mxu1 }
 0x400   :  { %1648 = vtanh.f32 %v378_v61  ;;  %v1300_v2 = vmul.f32 -1.442695, %v378_v61 }
 0x402   :  { %1650 = vpow2.f32 %v1300_v2 }
 0x40a   :  { %v1649_v63 = vpop.eup %1648 }
 0x40b   :  { %388 = vrot.lane.b32.xlu0 %v1649_v63, %s1834_s3 }
 0x40c   :  { %v1651_v3 = vpop.eup %1650 }
 0x40d   :  { %v382_v4 = vadd.f32 1.0, %v1651_v3 }
 0x40f   :  { %1652 = vrcp.f32 %v382_v4 }
 0x419   :  { %v1653_v5 = vpop.eup %1652 }
 0x41a   :  { %v386_v8 = vmul.f32 %v1653_v5, %v292_v55 }
 0x47d   :  { %v389_v6 = vpop.permute.xlu0 %388 }
 0x47e   :  { %v391_v7 = vmul.f32 %v1653_v5, %v389_v6 }
 0x480   :  { %393 = vrot.lane.b32.xlu1 %v391_v7, %s1835_s18 }
 0x4f2   :  { %v394_v9 = vpop.permute.xlu1 %393 }
 0x4f3   :  { %v396_v10 = vadd.f32 %v394_v9, %v386_v8 }
 0x4f5   :  { %1654 = vtanh.f32 %v396_v10 }
 0x4ff   :  { %v1655_v12 = vpop.eup %1654 }
 0x500   :  { %399 = vrot.lane.b32.xlu0 %v1655_v12, %s1834_s3 }
 0x572   :  { %v400_v13 = vpop.permute.xlu0 %399 }
 0x573   :  { %v402_v15 = vmul.f32 %v1653_v5, %v400_v13 }
 0x575   :  { %409 = vrot.lane.b32.xlu1 %v402_v15, %s1835_s18  ;;  %v1033_v31 = vrot.slane %v402_v15, 7 }
 0x577   :  { %v1062_v40 = vsel %vm199_vm2, %v2023_v58, %v1033_v31 }
 0x5e7   :  { %v410_v16 = vpop.permute.xlu1 %409 }
 0x5e8   :  { %1429 = vmatmul.mubr.msk.f32.vlgmr.msra.gmra.mrb[6].mxu1 %vm110_vm1, %v410_v16 }
 0x5e9   :  { %1566 = vmatpush3.bf16.msra.mxu1 %v1974_v11  ;;  %1450 = vmatprep.mubr.msk.f32.mxu1 %vm1832_vm0, %v1833_v1 }
 0x5ea   :  { %1567 = vmatprep.subr.bf16.mxu1 %v1831_v0 }
 0x5ed   :  { %1569 = vmatpush3.bf16.msra.mxu1 %v1978_v14 }
 0x5ee   :  { %1576 = vmatprep.subr.bf16.mxu1 %v1831_v0 }
 0x6bb   :  { %v479_v17 = vpop.f32.mrb[6].mxu1 }
 0x6bc   :  { %v483_v18 = vadd.f32 %v479_v17, %v2003_v34  ;;  %v1430_v19 = vpop.f32.mrb[7].mxu1  ;;  %v1048_v34 = vrot.slane %v2023_v58, 1 }
 0x6be   :  { %1656 = vtanh.f32 %v483_v18  ;;  %v1302_v21 = vmul.f32 -1.442695, %v483_v18  ;;  %v1075_v41 = vsel %vm199_vm2, %v1048_v34, %v402_v15 }
 0x6c0   :  { %1658 = vpow2.f32 %v1302_v21 }
 0x6c8   :  { %v1657_v20 = vpop.eup %1656 }
 0x6c9   :  { %493 = vrot.lane.b32.xlu0 %v1657_v20, %s1834_s3 }
 0x6ca   :  { %v1659_v22 = vpop.eup %1658 }
 0x6cb   :  { %v487_v23 = vadd.f32 1.0, %v1659_v22 }
 0x6cd   :  { %1660 = vrcp.f32 %v487_v23 }
 0x6d7   :  { %v1661_v24 = vpop.eup %1660 }
 0x6d8   :  { %v491_v27 = vmul.f32 %v1661_v24, %v396_v10 }
 0x73b   :  { %v494_v25 = vpop.permute.xlu0 %493 }
 0x73c   :  { %v496_v26 = vmul.f32 %v1661_v24, %v494_v25 }
 0x73e   :  { %498 = vrot.lane.b32.xlu1 %v496_v26, %s1835_s18 }
 0x7b0   :  { %v499_v28 = vpop.permute.xlu1 %498 }
 0x7b1   :  { %v501_v29 = vadd.f32 %v499_v28, %v491_v27 }
 0x7b3   :  { %1662 = vtanh.f32 %v501_v29 }
 0x7bd   :  { %v1663_v30 = vpop.eup %1662 }
 0x7be   :  { %504 = vrot.lane.b32.xlu0 %v1663_v30, %s1834_s3 }
 0x830   :  { %v505_v32 = vpop.permute.xlu0 %504 }
 0x831   :  { %v507_v33 = vmul.f32 %v1661_v24, %v505_v32 }
 0x833   :  { %v1035_v38 = vrot.slane %v507_v33, 6  ;;  %v1050_v39 = vrot.slane %v507_v33, 7  ;;  %514 = vrot.lane.b32.xlu1 %v507_v33, %s1835_s18 }
 0x835   :  { %v1064_v42 = vsel %vm1063_vm3, %v1062_v40, %v1035_v38  ;;  %v1076_v43 = vsel %vm1063_vm3, %v1075_v41, %v1050_v39 }
 0x8a5   :  { %v515_v46 = vpop.permute.xlu1 %514 }
 0x8a6   :  { %1440 = vmatmul.mubr.msk.f32.vlgmr.msra.gmra.mrb[0].mxu0 %vm110_vm1, %v515_v46 }
 0x8a7   :  { %1572 = vmatpush3.bf16.msra.mxu0 %v1974_v11  ;;  %1461 = vmatprep.mubr.msk.f32.mxu0 %vm1832_vm0, %v1833_v1 }
 0x8a8   :  { %1573 = vmatprep.subr.bf16.mxu0 %v1831_v0 }
 0x8ab   :  { %1575 = vmatpush3.bf16.msra.mxu0 %v1978_v14 }
 0x8ac   :  { %1582 = vmatprep.subr.bf16.mxu0 %v1831_v0 }
 0x979   :  { %v584_v47 = vpop.f32.mrb[0].mxu0 }
 0x97a   :  { %v588_v48 = vadd.f32 %v584_v47, %v2006_v35  ;;  %v1441_v49 = vpop.f32.mrb[1].mxu0 }
 0x97c   :  { %1664 = vtanh.f32 %v588_v48  ;;  %v1304_v51 = vmul.f32 -1.442695, %v588_v48 }
 0x97e   :  { %1666 = vpow2.f32 %v1304_v51 }
 0x986   :  { %v1665_v50 = vpop.eup %1664 }
 0x987   :  { %598 = vrot.lane.b32.xlu0 %v1665_v50, %s1834_s3 }
 0x988   :  { %v1667_v52 = vpop.eup %1666 }
 0x989   :  { %v592_v53 = vadd.f32 1.0, %v1667_v52 }
 0x98b   :  { %1668 = vrcp.f32 %v592_v53 }
 0x995   :  { %v1669_v54 = vpop.eup %1668 }
 0x996   :  { %v596_v57 = vmul.f32 %v1669_v54, %v501_v29 }
 0x9f9   :  { %v599_v55 = vpop.permute.xlu0 %598 }
 0x9fa   :  { %v601_v56 = vmul.f32 %v1669_v54, %v599_v55 }
 0x9fc   :  { %603 = vrot.lane.b32.xlu1 %v601_v56, %s1835_s18 }
 0xa6e   :  { %v604_v58 = vpop.permute.xlu1 %603 }
 0xa6f   :  { %v606_v59 = vadd.f32 %v604_v58, %v596_v57 }
 0xa71   :  { %1670 = vtanh.f32 %v606_v59 }
 0xa7b   :  { %v1671_v35 = vpop.eup %1670 }
 0xa7c   :  { %609 = vrot.lane.b32.xlu0 %v1671_v35, %s1834_s3 }
 0xaee   :  { %v610_v60 = vpop.permute.xlu0 %609 }
 0xaef   :  { %v612_v61 = vmul.f32 %v1669_v54, %v610_v60 }
 0xaf1   :  { %v1037_v62 = vrot.slane %v612_v61, 5  ;;  %v1052_v63 = vrot.slane %v612_v61, 6  ;;  %619 = vrot.lane.b32.xlu1 %v612_v61, %s1835_s18 }
 0xaf3   :  { %v1066_v2 = vsel %vm1065_vm4, %v1064_v42, %v1037_v62  ;;  %v1077_v3 = vsel %vm1065_vm4, %v1076_v43, %v1052_v63 }
 0xb63   :  { %v620_v4 = vpop.permute.xlu1 %619 }
 0xb64   :  { %1451 = vmatmul.mubr.msk.f32.vlgmr.msra.gmra.mrb[8].mxu1 %vm110_vm1, %v620_v4 }
 0xb65   :  { %1578 = vmatpush3.bf16.msra.mxu1 %v1974_v11  ;;  %1472 = vmatprep.mubr.msk.f32.mxu1 %vm1832_vm0, %v1833_v1 }
 0xb66   :  { %1579 = vmatprep.subr.bf16.mxu1 %v1831_v0 }
 0xb69   :  { %1581 = vmatpush3.bf16.msra.mxu1 %v1978_v14 }
 0xc37   :  { %v689_v5 = vpop.f32.mrb[8].mxu1 }
 0xc38   :  { %v693_v6 = vadd.f32 %v689_v5, %v2009_v36  ;;  %v1452_v7 = vpop.f32.mrb[9].mxu1 }
 0xc3a   :  { %1672 = vtanh.f32 %v693_v6  ;;  %v1306_v9 = vmul.f32 -1.442695, %v693_v6 }
 0xc3c   :  { %1674 = vpow2.f32 %v1306_v9 }
 0xc44   :  { %v1673_v8 = vpop.eup %1672 }
 0xc45   :  { %703 = vrot.lane.b32.xlu0 %v1673_v8, %s1834_s3 }
 0xc46   :  { %v1675_v10 = vpop.eup %1674 }
 0xc47   :  { %v697_v12 = vadd.f32 1.0, %v1675_v10 }
 0xc49   :  { %1676 = vrcp.f32 %v697_v12 }
 0xc53   :  { %v1677_v13 = vpop.eup %1676 }
 0xc54   :  { %v701_v17 = vmul.f32 %v1677_v13, %v606_v59 }
 0xcb7   :  { %v704_v15 = vpop.permute.xlu0 %703 }
 0xcb8   :  { %v706_v16 = vmul.f32 %v1677_v13, %v704_v15 }
 0xcba   :  { %708 = vrot.lane.b32.xlu1 %v706_v16, %s1835_s18 }
 0xd2c   :  { %v709_v18 = vpop.permute.xlu1 %708 }
 0xd2d   :  { %v711_v19 = vadd.f32 %v709_v18, %v701_v17 }
 0xd2f   :  { %1678 = vtanh.f32 %v711_v19 }
 0xd39   :  { %v1679_v36 = vpop.eup %1678 }
 0xd3a   :  { %714 = vrot.lane.b32.xlu0 %v1679_v36, %s1834_s3  ;;  %v1083_v36 = vld [vmem:[#allocation7 + $0x8] sm:$0xff] }
 0xdac   :  { %v715_v20 = vpop.permute.xlu0 %714 }
 0xdad   :  { %v717_v21 = vmul.f32 %v1677_v13, %v715_v20  ;;  %v1084_v20 = vld [vmem:[#allocation7 + $0x10] sm:$0xff] }
 0xdaf   :  { %v1039_v22 = vrot.slane %v717_v21, 4  ;;  %v1054_v23 = vrot.slane %v717_v21, 5  ;;  %724 = vrot.lane.b32.xlu1 %v717_v21, %s1835_s18 }
 0xdb1   :  { %v1068_v24 = vsel %vm1067_vm5, %v1066_v2, %v1039_v22  ;;  %v1078_v25 = vsel %vm1067_vm5, %v1077_v3, %v1054_v23  ;;  %v1085_v22 = vld [vmem:[#allocation7 + $0x18] sm:$0xff] }
 0xdb2   :  { %v1592_v23 = vpack.c.bf16 %v1085_v22, %v1084_v20 }
 0xe21   :  { %v725_v26 = vpop.permute.xlu1 %724 }
 0xe22   :  { %1462 = vmatmul.mubr.msk.f32.vlgmr.msra.gmra.mrb[2].mxu0 %vm110_vm1, %v725_v26  ;;  %v1189_v26 = vld [vmem:[#allocation9 + $0x8] sm:$0xff] }
 0xe23   :  { %1584 = vmatpush3.bf16.msra.mxu0 %v1974_v11  ;;  %1483 = vmatprep.mubr.msk.f32.mxu0 %vm1832_vm0, %v1833_v1 }
 0xe24   :  { %1585 = vmatprep.subr.bf16.mxu0 %v1831_v0 }
 0xe27   :  { %1587 = vmatpush3.bf16.msra.mxu0 %v1978_v14 }
 0xef5   :  { %v794_v27 = vpop.f32.mrb[2].mxu0 }
 0xef6   :  { %v798_v28 = vadd.f32 %v794_v27, %v2012_v37  ;;  %v1463_v29 = vpop.f32.mrb[3].mxu0  ;;  %v1190_v27 = vld [vmem:[#allocation9 + $0x10] sm:$0xff] }
 0xef7   :  { %v1191_v29 = vld [vmem:[#allocation9 + $0x18] sm:$0xff] }
 0xef8   :  { %1680 = vtanh.f32 %v798_v28  ;;  %v1308_v31 = vmul.f32 -1.442695, %v798_v28 }
 0xefa   :  { %1682 = vpow2.f32 %v1308_v31  ;;  %v1192_v31 = vld [vmem:[#allocation9 + $0x20] sm:$0xff] }
 0xf02   :  { %v1681_v30 = vpop.eup %1680 }
 0xf03   :  { %808 = vrot.lane.b32.xlu0 %v1681_v30, %s1834_s3  ;;  %v1600_v30 = vpack.c.bf16 %v1191_v29, %v1190_v27 }
 0xf04   :  { %v1683_v32 = vpop.eup %1682 }
 0xf05   :  { %v802_v33 = vadd.f32 1.0, %v1683_v32  ;;  %v1193_v32 = vld [vmem:[#allocation9 + $0x28] sm:$0xff] }
 0xf07   :  { %1684 = vrcp.f32 %v802_v33  ;;  %v1604_v33 = vpack.c.bf16 %v1193_v32, %v1192_v31 }
 0xf11   :  { %v1685_v11 = vpop.eup %1684 }
 0xf12   :  { %v806_v0 = vmul.f32 %v1685_v11, %v711_v19 }
 0xf75   :  { %v809_v34 = vpop.permute.xlu0 %808 }
 0xf76   :  { %v811_v1 = vmul.f32 %v1685_v11, %v809_v34 }
 0xf78   :  { %813 = vrot.lane.b32.xlu1 %v811_v1, %s1835_s18 }
 0xfea   :  { %v814_v14 = vpop.permute.xlu1 %813 }
 0xfeb   :  { %v816_v38 = vadd.f32 %v814_v14, %v806_v0 }
 0xfed   :  { %1686 = vtanh.f32 %v816_v38 }
 0xff7   :  { %v1687_v37 = vpop.eup %1686 }
 0xff8   :  { %819 = vrot.lane.b32.xlu0 %v1687_v37, %s1834_s3 }
0x106a   :  { %v820_v39 = vpop.permute.xlu0 %819 }
0x106b   :  { %v822_v40 = vmul.f32 %v1685_v11, %v820_v39 }
0x106d   :  { %v1041_v41 = vrot.slane %v822_v40, 3  ;;  %v1056_v42 = vrot.slane %v822_v40, 4  ;;  %829 = vrot.lane.b32.xlu1 %v822_v40, %s1835_s18  ;;  %v1194_v40 = vld [vmem:[#allocation9 + $0x30] sm:$0xff] }
0x106f   :  { %v1070_v43 = vsel %vm1069_vm6, %v1068_v24, %v1041_v41  ;;  %v1079_v46 = vsel %vm1069_vm6, %v1078_v25, %v1056_v42  ;;  %v1188_v25 = vld [vmem:[#allocation9] sm:$0xff]  ;;  %v1195_v41 = vld [vmem:[#allocation9 + $0x38] sm:$0xff] }
0x1070   :  { %v1596_v28 = vpack.c.bf16 %v1189_v26, %v1188_v25  ;;  %v1608_v42 = vpack.c.bf16 %v1195_v41, %v1194_v40 }
0x1072   :  { %1597 = vmatprep.subr.bf16.mxu0 %v1596_v28 }
0x10df   :  { %v830_v47 = vpop.permute.xlu1 %829 }
0x10e0   :  { %1473 = vmatmul.mubr.msk.f32.vlgmr.msra.gmra.mrb[10].mxu1 %vm110_vm1, %v830_v47 }
0x11b3   :  { %v899_v48 = vpop.f32.mrb[10].mxu1 }
0x11b4   :  { %v903_v49 = vadd.f32 %v899_v48, %v2015_v44  ;;  %v1474_v50 = vpop.f32.mrb[11].mxu1  ;;  %v1198_v48 = vld [vmem:[#allocation9 + $0x50] sm:$0xff] }
0x11b6   :  { %1688 = vtanh.f32 %v903_v49  ;;  %v1310_v52 = vmul.f32 -1.442695, %v903_v49  ;;  %v1199_v49 = vld [vmem:[#allocation9 + $0x58] sm:$0xff] }
0x11b7   :  { %v1616_v50 = vpack.c.bf16 %v1199_v49, %v1198_v48 }
0x11b8   :  { %1690 = vpow2.f32 %v1310_v52  ;;  %v1201_v52 = vld [vmem:[#allocation9 + $0x68] sm:$0xff] }
0x11c0   :  { %v1689_v51 = vpop.eup %1688 }
0x11c1   :  { %913 = vrot.lane.b32.xlu0 %v1689_v51, %s1834_s3  ;;  %v1200_v51 = vld [vmem:[#allocation9 + $0x60] sm:$0xff] }
0x11c2   :  { %v1691_v53 = vpop.eup %1690 }
0x11c3   :  { %v907_v54 = vadd.f32 1.0, %v1691_v53  ;;  %v1620_v53 = vpack.c.bf16 %v1201_v52, %v1200_v51 }
0x11c5   :  { %1692 = vrcp.f32 %v907_v54  ;;  %v1202_v54 = vld [vmem:[#allocation9 + $0x70] sm:$0xff] }
0x11cf   :  { %v1693_v55 = vpop.eup %1692 }
0x11d0   :  { %v911_v58 = vmul.f32 %v1693_v55, %v816_v38 }
0x1233   :  { %v914_v56 = vpop.permute.xlu0 %913 }
0x1234   :  { %v916_v57 = vmul.f32 %v1693_v55, %v914_v56 }
0x1236   :  { %918 = vrot.lane.b32.xlu1 %v916_v57, %s1835_s18  ;;  %v1313_v57 = vld [vmem:[%s2120_s5] ss:$0 sm:$0xff] }
0x12a8   :  { %v919_v59 = vpop.permute.xlu1 %918 }
0x12a9   :  { %v921_v35 = vadd.f32 %v919_v59, %v911_v58 }
0x12ab   :  { %1694 = vtanh.f32 %v921_v35 }
0x12b5   :  { %v1695_v44 = vpop.eup %1694 }
0x12b6   :  { %924 = vrot.lane.b32.xlu0 %v1695_v44, %s1834_s3 }
0x1328   :  { %v925_v60 = vpop.permute.xlu0 %924 }
0x1329   :  { %v927_v61 = vmul.f32 %v1693_v55, %v925_v60  ;;  %v1203_v55 = vld [vmem:[#allocation9 + $0x78] sm:$0xff] }
0x132a   :  { %v1624_v56 = vpack.c.bf16 %v1203_v55, %v1202_v54 }
0x132b   :  { %v1043_v62 = vrot.slane %v927_v61, 2  ;;  %v1058_v63 = vrot.slane %v927_v61, 3  ;;  %934 = vrot.lane.b32.xlu1 %v927_v61, %s1835_s18 }
0x132d   :  { %v1072_v2 = vsel %vm1071_vm7, %v1070_v43, %v1043_v62  ;;  %v1080_v3 = vsel %vm1071_vm7, %v1079_v46, %v1058_v63  ;;  %v1196_v43 = vld [vmem:[#allocation9 + $0x40] sm:$0xff]  ;;  %v1197_v46 = vld [vmem:[#allocation9 + $0x48] sm:$0xff] }
0x132e   :  { %v1612_v47 = vpack.c.bf16 %v1197_v46, %v1196_v43 }
0x139d   :  { %v935_v4 = vpop.permute.xlu1 %934 }
0x139e   :  { %1484 = vmatmul.mubr.msk.f32.vlgmr.msra.gmra.mrb[4].mxu0 %vm110_vm1, %v935_v4 }
0x139f   :  { %1599 = vmatpush3.bf16.msra.mxu0 %v1596_v28 }
0x13a0   :  { %1601 = vmatprep.subr.bf16.mxu0 %v1600_v30 }
0x13a3   :  { %1603 = vmatpush3.bf16.msra.mxu0 %v1600_v30 }
0x13a4   :  { %1605 = vmatprep.subr.bf16.mxu0 %v1604_v33 }
0x13a7   :  { %1607 = vmatpush3.bf16.msra.mxu0 %v1604_v33 }
0x13a8   :  { %1609 = vmatprep.subr.bf16.mxu0 %v1608_v42 }
0x13ab   :  { %1611 = vmatpush3.bf16.msra.mxu0 %v1608_v42 }
0x13ac   :  { %1613 = vmatprep.subr.bf16.mxu0 %v1612_v47 }
0x13af   :  { %1615 = vmatpush3.bf16.msra.mxu0 %v1612_v47 }
0x13b0   :  { %1617 = vmatprep.subr.bf16.mxu0 %v1616_v50 }
0x13b3   :  { %1619 = vmatpush3.bf16.msra.mxu0 %v1616_v50 }
0x13b4   :  { %1621 = vmatprep.subr.bf16.mxu0 %v1620_v53 }
0x13b7   :  { %1623 = vmatpush3.bf16.msra.mxu0 %v1620_v53 }
0x13b8   :  { %1625 = vmatprep.subr.bf16.mxu0 %v1624_v56 }
0x13bb   :  { %1627 = vmatpush3.bf16.msra.mxu0 %v1624_v56 }
0x1471   :  { %v1004_v5 = vpop.f32.mrb[4].mxu0 }
0x1472   :  { %v1008_v6 = vadd.f32 %v1004_v5, %v2018_v45  ;;  %v1485_v7 = vpop.f32.mrb[5].mxu0  ;;  %v1082_v45 = vld [vmem:[#allocation7] sm:$0xff] }
0x1473   :  { %v1588_v21 = vpack.c.bf16 %v1083_v36, %v1082_v45 }
0x1474   :  { %1696 = vtanh.f32 %v1008_v6  ;;  %v1312_v9 = vmul.f32 -1.442695, %v1008_v6 }
0x1475   :  { %1589 = vmatprep.subr.bf16.mxu1 %v1588_v21 }
0x1476   :  { %1698 = vpow2.f32 %v1312_v9  ;;  %1591 = vmatpush3.bf16.msra.mxu1 %v1588_v21 }
0x1477   :  { %1593 = vmatprep.subr.bf16.mxu1 %v1592_v23 }
0x147a   :  { %1595 = vmatpush3.bf16.msra.mxu1 %v1592_v23 }
0x147e   :  { %v1697_v8 = vpop.eup %1696 }
0x147f   :  { %1018 = vrot.lane.b32.xlu0 %v1697_v8, %s1834_s3  ;;  %v1316_v8 = vld [vmem:[%s2122_s7] ss:$0 sm:$0xff] }
0x1480   :  { %v1699_v10 = vpop.eup %1698 }
0x1481   :  { %v1012_v12 = vadd.f32 1.0, %v1699_v10 }
0x1483   :  { %1700 = vrcp.f32 %v1012_v12 }
0x148d   :  { %v1701_v13 = vpop.eup %1700 }
0x148e   :  { %v1016_v17 = vmul.f32 %v1701_v13, %v921_v35 }
0x14f1   :  { %v1019_v15 = vpop.permute.xlu0 %1018 }
0x14f2   :  { %v1021_v16 = vmul.f32 %v1701_v13, %v1019_v15 }
0x14f4   :  { %1023 = vrot.lane.b32.xlu1 %v1021_v16, %s1835_s18 }
0x1566   :  { %v1024_v18 = vpop.permute.xlu1 %1023 }
0x1567   :  { %v1026_v19 = vadd.f32 %v1024_v18, %v1016_v17 }
0x1569   :  { %1702 = vtanh.f32 %v1026_v19 }
0x1573   :  { %v1703_v24 = vpop.eup %1702 }
0x1574   :  { %1029 = vrot.lane.b32.xlu0 %v1703_v24, %s1834_s3 }
0x15e6   :  { %v1030_v11 = vpop.permute.xlu0 %1029 }
0x15e7   :  { %v1032_v34 = vmul.f32 %v1701_v13, %v1030_v11 }
0x15e9   :  { %v1046_v1 = vrot.slane %v1032_v34, 1  ;;  %v1060_v0 = vrot.slane %v1032_v34, 2 }
0x15eb   :  { %v1074_v14 = vsel %vm1073_vm8, %v1072_v2, %v1046_v1  ;;  %v1081_v38 = vsel %vm1073_vm8, %v1080_v3, %v1060_v0 }
0x15ec   :  { %1095 = vrot.lane.b32.xlu1 %v1074_v14, %s1835_s18  ;;  %1097 = vrot.lane.b32.xlu0 %v1081_v38, %s1835_s18 }
0x165e   :  { %v1096_v37 = vpop.permute.xlu1 %1095  ;;  %v1098_v39 = vpop.permute.xlu0 %1097 }
0x165f   :  { %1494 = vmatprep.mubr.msk.f32.mxu1 %vm110_vm1, %v1096_v37 }
0x1660   :  { %1495 = vmatmul.mubr.msk.f32.vlgmr.msra.gmra.mrb[12].mxu1 %vm110_vm1, %v1098_v39 }
0x1733   :  { %v1496_v58 = vpop.f32.mrb[12].mxu1 }
0x1734   :  { %v1175_v59 = vadd.f32 %v1496_v58, %v1313_v57  ;;  %v1169_v35 = vpop.f32.mrb[13].mxu1 }
0x1735   :  { %v1170_v44 = vadd.f32 %v1313_v57, %v1169_v35 }
0x1736   :  { %v1181_v60 = vmul.f32 0.70710677, %v1175_v59  ;;  %v1179_v5 = vmul.f32 0.5, %v1175_v59 }
0x1737   :  { %v1180_v61 = vmul.f32 0.70710677, %v1170_v44  ;;  %v1178_v3 = vmul.f32 0.5, %v1170_v44 }
0x1738   :  { %1704 = verf.f32 %v1181_v60 }
0x1739   :  { %1706 = verf.f32 %v1180_v61 }
0x1742   :  { %v1705_v62 = vpop.eup %1704 }
0x1743   :  { %v1707_v63 = vpop.eup %1706  ;;  %v1185_v2 = vadd.f32 1.0, %v1705_v62 }
0x1744   :  { %v1184_v4 = vadd.f32 1.0, %v1707_v63 }
0x1745   :  { %v1187_v7 = vmul.f32 %v1185_v2, %v1179_v5 }
0x1746   :  { %v1186_v6 = vmul.f32 %v1184_v4, %v1178_v3 }
0x1748   :  { %1529 = vmatprep.mubr.f32.mxu0 %v1186_v6 }
0x1749   :  { %1530 = vmatmul.mubr.f32.vlgmr.msra.gmra.mrb[6].mxu0 %v1187_v7 }
0x181c   :  { %v1531_v9 = vpop.f32.mrb[6].mxu0 }
0x181d   :  { %v1283_v10 = vadd.f32 %v1531_v9, %v1316_v8  ;;  %v1277_v12 = vpop.f32.mrb[7].mxu0 }
0x181e   :  { %v1278_v13 = vadd.f32 %v1316_v8, %v1277_v12 }
0x181f   :  { %1287 = vst [vmem:[%s2123_s8 + $0x8] sm:$0xff] %v1283_v10 }
0x1820   :  { %1286 = vst [vmem:[%s2123_s8] sm:$0xff] %v1278_v13 }
0x1821   :  { %1292 = vsyncpa [#allocation3], 1 }
0x1822   :  { %1293 = vsyncpa [#allocation5], 1 }
0x1823   :  { %1294 = vsyncpa [#allocation8], 1 }

</bundles_post_ra>
